<compile_context>
chip_gen: v7x
topology: tpu7x:2x2x1
jax: 0.10.0
libtpu: 0.0.40
codegen_flags: <defaults>
</compile_context>

<pallas_src>
import jax
import jax.numpy as jnp
from jax.experimental import pallas as pl
from jax.experimental.pallas import tpu as pltpu

_EPS = 1e-5                      # nn.BatchNorm1d default eps
_VMEM_LIMIT = 32 * 1024 * 1024   # safe on v5e/v6e (128 MiB phys) and v7x (64 MiB phys)


def _round_up(x, m):
    return ((x + m - 1) // m) * m


def _choose_tile_m(M, K_pad, N_pad, max_tile_m=None, budget_bytes=8 * 1024 * 1024):
    # pass-1 per-row VMEM per pipeline step: double-buffered bf16 x tile,
    # double-buffered f32 y tile, ~2 f32 temporaries of the y tile.
    per_row = 4 * K_pad + 16 * N_pad
    tm = budget_bytes // max(per_row, 1)
    tm = max(8, min(512, (tm // 8) * 8))         # cap re-derived for v7x's smaller VMEM
    tm = min(tm, _round_up(M, 8))
    if max_tile_m is not None:
        tm = min(tm, max(8, (max_tile_m // 8) * 8))
    return tm


def _matmul_stats_kernel(x_ref, w_ref, y_ref, stats_ref):
    # x_ref: (tm, K_pad) bf16   w_ref: (K_pad, N_pad) bf16 (constant index -> VMEM resident)
    # y_ref: (tm, N_pad) f32    stats_ref: (1, 2, N_pad) f32 per-tile partial sums
    y = jnp.dot(x_ref[...], w_ref[...], preferred_element_type=jnp.float32)
    y_ref[...] = y.astype(y_ref.dtype)
    s = jnp.sum(y, axis=0, keepdims=True)          # (1, N_pad)
    ss = jnp.sum(y * y, axis=0, keepdims=True)     # (1, N_pad)
    stats_ref[0] = jnp.concatenate([s, ss], axis=0)


def _bn_elu_kernel(y_ref, scale_ref, shift_ref, o_ref):
    # Fused BN affine + ELU(alpha=1): one mul + one add per element, then expm1/where.
    z = y_ref[...] * scale_ref[...] + shift_ref[...]
    o_ref[...] = jnp.where(z > 0, z, jnp.expm1(z)).astype(o_ref.dtype)


def conv_layer_forward(x, conv_w, conv_b, bn_gamma, bn_beta, window_size, *, max_tile_m=None):
    """x: (B, C_in, L) NCL (PyTorch Conv1d layout). Returns (B, C_out, L // window_size)."""
    del conv_b  # exactly cancelled by training-mode BatchNorm mean subtraction
    B, C_in, L = x.shape
    C_out = conv_w.shape[0]
    W = window_size
    L_out = L // W                      # Conv1d truncates a trailing partial window
    M, K, N = B * L_out, C_in * W, C_out

    # --- layout glue: one transpose each way is the minimum for the NCL public API ---
    x_win = x[:, :, : L_out * W].reshape(B, C_in, L_out, W)
    x_mat = jnp.transpose(x_win, (0, 2, 1, 3)).reshape(M, K)     # (M, K)
    w_mat = jnp.transpose(conv_w.reshape(C_out, K))              # (K, N)

    # --- padding: lane-dense K/N (128 multiples), M to a tile multiple ---
    K_pad = _round_up(K, 128)
    N_pad = _round_up(N, 128)
    tm = _choose_tile_m(M, K_pad, N_pad, max_tile_m)
    M_pad = _round_up(M, tm)
    g = M_pad // tm

    x_mat = jnp.pad(x_mat, ((0, M_pad - M), (0, K_pad - K))).astype(jnp.bfloat16)
    w_mat = jnp.pad(w_mat, ((0, K_pad - K), (0, N_pad - N))).astype(jnp.bfloat16)

    cparams = pltpu.CompilerParams(
        dimension_semantics=("parallel",), vmem_limit_bytes=_VMEM_LIMIT)

    # --- pass 1: tiled matmul + per-tile partial BN stats ---
    # TODO(synk): for very large C_in*W, additionally tile K with an f32 VMEM accumulator.
    y, stats = pl.pallas_call(
        _matmul_stats_kernel,
        grid=(g,),
        in_specs=[
            pl.BlockSpec((tm, K_pad), lambda i: (i, 0)),
            pl.BlockSpec((K_pad, N_pad), lambda i: (0, 0)),   # constant -> stays resident
        ],
        out_specs=[
            pl.BlockSpec((tm, N_pad), lambda i: (i, 0)),
            pl.BlockSpec((1, 2, N_pad), lambda i: (i, 0, 0)),
        ],
        out_shape=(
            jax.ShapeDtypeStruct((M_pad, N_pad), jnp.float32),
            jax.ShapeDtypeStruct((g, 2, N_pad), jnp.float32),
        ),
        compiler_params=cparams,
        cost_estimate=pl.CostEstimate(
            flops=2 * M_pad * K_pad * N_pad,
            transcendentals=0,
            bytes_accessed=(M_pad * K_pad * 2 + K_pad * N_pad * 2
                            + M_pad * N_pad * 4 + g * 2 * N_pad * 4)),
    )(x_mat, w_mat)

    # --- tiny per-channel reduction + BN affine fold (XLA glue, O(g*N) work) ---
    # Padded (zero) rows contribute 0 to both sums, so divide by the TRUE M.
    mean = jnp.sum(stats[:, 0, :], axis=0) / M
    var = jnp.maximum(jnp.sum(stats[:, 1, :], axis=0) / M - mean * mean, 0.0)
    gamma_p = jnp.pad(bn_gamma.astype(jnp.float32), (0, N_pad - N))
    beta_p = jnp.pad(bn_beta.astype(jnp.float32), (0, N_pad - N))
    scale = gamma_p * jax.lax.rsqrt(var + _EPS)
    shift = beta_p - mean * scale
    scale = scale.reshape(1, N_pad)
    shift = shift.reshape(1, N_pad)

    # --- pass 2: tiled fused normalize + ELU ---
    out_mat = pl.pallas_call(
        _bn_elu_kernel,
        grid=(g,),
        in_specs=[
            pl.BlockSpec((tm, N_pad), lambda i: (i, 0)),
            pl.BlockSpec((1, N_pad), lambda i: (0, 0)),
            pl.BlockSpec((1, N_pad), lambda i: (0, 0)),
        ],
        out_specs=pl.BlockSpec((tm, N_pad), lambda i: (i, 0)),
        out_shape=jax.ShapeDtypeStruct((M_pad, N_pad), jnp.float32),
        compiler_params=cparams,
        cost_estimate=pl.CostEstimate(
            flops=4 * M_pad * N_pad,
            transcendentals=M_pad * N_pad,
            bytes_accessed=2 * M_pad * N_pad * 4),
    )(y, scale, shift)

    # --- glue: strip padding, back to NCL ---
    out_mat = out_mat[:M, :N]
    return jnp.transpose(out_mat.reshape(B, L_out, C_out), (0, 2, 1))
    # TODO(synk): BatchNorm running-mean/var buffer updates (training side effect)
    # are not modeled; only the forward output (batch statistics) is produced.


def _reference(x, conv_w, conv_b, bn_gamma, bn_beta, window_size, matmul_dtype=jnp.float32):
    """Pure-JAX reference (keeps the conv bias, which BN then cancels)."""
    B, C_in, L = x.shape
    W = window_size
    L_out = L // W
    x_win = x[:, :, : L_out * W].reshape(B, C_in, L_out, W)
    y = jnp.einsum("bclw,ocw->bol",
                   x_win.astype(matmul_dtype), conv_w.astype(matmul_dtype),
                   preferred_element_type=jnp.float32)
    y = y + conv_b[None, :, None]
    mean = jnp.mean(y, axis=(0, 2), keepdims=True)
    var = jnp.mean((y - mean) ** 2, axis=(0, 2), keepdims=True)
    y = (y - mean) * jax.lax.rsqrt(var + _EPS)
    y = y * bn_gamma[None, :, None] + bn_beta[None, :, None]
    return jnp.where(y > 0, y, jnp.expm1(y))


if __name__ == "__main__":
    key = jax.random.PRNGKey(0)
    k_x, k_w, k_b, k_g, k_be, k_x2 = jax.random.split(key, 6)

    # Config 1: small, single M tile.
    B, C, L, W = 2, 4, 16, 4
    x = jax.random.normal(k_x, (B, C, L), dtype=jnp.float32)
    conv_w = 0.1 * jax.random.normal(k_w, (C, C, W), dtype=jnp.float32)   # (C_out, C_in, W)
    conv_b = 0.05 * jax.random.normal(k_b, (C,), dtype=jnp.float32)
    bn_gamma = 1.0 + 0.1 * jax.random.normal(k_g, (C,), dtype=jnp.float32)
    bn_beta = 0.1 * jax.random.normal(k_be, (C,), dtype=jnp.float32)

    out = jax.block_until_ready(conv_layer_forward(x, conv_w, conv_b, bn_gamma, bn_beta, W))
    assert out.shape == (B, C, L // W), out.shape
    ref_bf16 = _reference(x, conv_w, conv_b, bn_gamma, bn_beta, W, matmul_dtype=jnp.bfloat16)
    ref_f32 = _reference(x, conv_w, conv_b, bn_gamma, bn_beta, W, matmul_dtype=jnp.float32)
    assert jnp.allclose(out, ref_bf16, atol=1e-3, rtol=1e-3), "mismatch vs bf16-matmul reference"
    assert jnp.allclose(out, ref_f32, atol=5e-2, rtol=5e-2), "mismatch vs f32 reference"

    # Config 2: non-aligned M/K/N, multiple M tiles (exercises padding + partial-stat reduce).
    B2, C2, L2, W2 = 4, 6, 20, 4
    x2 = jax.random.normal(k_x2, (B2, C2, L2), dtype=jnp.float32)
    conv_w2 = 0.1 * jax.random.normal(k_w, (C2, C2, W2), dtype=jnp.float32)
    conv_b2 = 0.05 * jax.random.normal(k_b, (C2,), dtype=jnp.float32)
    g2 = 1.0 + 0.1 * jax.random.normal(k_g, (C2,), dtype=jnp.float32)
    b2 = 0.1 * jax.random.normal(k_be, (C2,), dtype=jnp.float32)
    out2 = jax.block_until_ready(
        conv_layer_forward(x2, conv_w2, conv_b2, g2, b2, W2, max_tile_m=8))
    ref2 = _reference(x2, conv_w2, conv_b2, g2, b2, W2, matmul_dtype=jnp.bfloat16)
    assert out2.shape == (B2, C2, L2 // W2), out2.shape
    assert jnp.allclose(out2, ref2, atol=1e-3, rtol=1e-3), "mismatch (multi-tile config)"

    print("KERNEL_OK")
</pallas_src>

<mosaic_0001>
module attributes {stable_mosaic.version = 11 : i64} {
  func.func @_matmul_stats_kernel(%arg0: i32, %arg1: memref<8x128xbf16, #tpu.memory_space<vmem>>, %arg2: memref<128x128xbf16, #tpu.memory_space<vmem>>, %arg3: memref<8x128xf32, #tpu.memory_space<vmem>>, %arg4: memref<1x2x128xf32, #tpu.memory_space<vmem>>) attributes {dimension_semantics = [#tpu.dimension_semantics<parallel>], iteration_bounds = array<i64: 1>, scalar_prefetch = 0 : i64, scratch_operands = 0 : i64, tpu.core_type = #tpu.core_type<tc>, window_params = [{transform_indices = @transform_0, window_bounds = array<i64: 8, 128>}, {pipeline_mode = #tpu.pipeline_mode<synchronous>, transform_indices = @transform_1, window_bounds = array<i64: 128, 128>}, {transform_indices = @transform_2, window_bounds = array<i64: 8, 128>}, {transform_indices = @transform_3, window_bounds = array<i64: 1, 2, 128>}]} {
    %c0 = arith.constant 0 : index
    %c0_0 = arith.constant 0 : index
    %0 = vector.load %arg1[%c0, %c0_0] : memref<8x128xbf16, #tpu.memory_space<vmem>>, vector<8x128xbf16>
    %c0_1 = arith.constant 0 : index
    %c0_2 = arith.constant 0 : index
    %1 = vector.load %arg2[%c0_1, %c0_2] : memref<128x128xbf16, #tpu.memory_space<vmem>>, vector<128x128xbf16>
    %cst = arith.constant dense<0.000000e+00> : vector<8x128xf32>
    %2 = tpu.matmul %0, %1, %cst {dimension_numbers = #tpu.dot_dimension_numbers<[1], [0], [0], [1], [0, 0, 1, 1], [], []>} : vector<8x128xbf16>, vector<128x128xbf16>, vector<8x128xf32> -> vector<8x128xf32>
    %c0_3 = arith.constant 0 : index
    %c0_4 = arith.constant 0 : index
    %3 = vector.load %arg3[%c0_3, %c0_4] : memref<8x128xf32, #tpu.memory_space<vmem>>, vector<8x128xf32>
    tpu.vector_store %arg3[%c0_3, %c0_4], %2 {strides = array<i32>} : memref<8x128xf32, #tpu.memory_space<vmem>>, vector<8x128xf32>,
    %cst_5 = arith.constant dense<0.000000e+00> : vector<128xf32>
    %4 = vector.multi_reduction <add>, %2, %cst_5 [0] : vector<8x128xf32> to vector<128xf32>
    %5 = vector.shape_cast %4 : vector<128xf32> to vector<1x128xf32>
    %6 = arith.mulf %2, %2 : vector<8x128xf32>
    %cst_6 = arith.constant dense<0.000000e+00> : vector<128xf32>
    %7 = vector.multi_reduction <add>, %6, %cst_6 [0] : vector<8x128xf32> to vector<128xf32>
    %8 = vector.shape_cast %7 : vector<128xf32> to vector<1x128xf32>
    %9 = tpu.concatenate %5, %8 in 0 : vector<1x128xf32>, vector<1x128xf32> -> vector<2x128xf32>
    %c0_7 = arith.constant 0 : index
    %c0_8 = arith.constant 0 : index
    %c0_9 = arith.constant 0 : index
    %10 = vector.load %arg4[%c0_7, %c0_8, %c0_9] : memref<1x2x128xf32, #tpu.memory_space<vmem>>, vector<1x2x128xf32>
    %11 = vector.shape_cast %10 : vector<1x2x128xf32> to vector<2x128xf32>
    %12 = vector.shape_cast %9 : vector<2x128xf32> to vector<1x2x128xf32>
    tpu.vector_store %arg4[%c0_7, %c0_8, %c0_9], %12 {strides = array<i32>} : memref<1x2x128xf32, #tpu.memory_space<vmem>>, vector<1x2x128xf32>,
    return
  }
  func.func @transform_0(%arg0: i32) -> (i32, i32) {
    %c0_i32 = arith.constant 0 : i32
    %c0_i32_0 = arith.constant 0 : i32
    return %arg0, %c0_i32 : i32, i32
  }
  func.func @transform_1(%arg0: i32) -> (i32, i32) {
    %c0_i32 = arith.constant 0 : i32
    %c0_i32_0 = arith.constant 0 : i32
    %c0_i32_1 = arith.constant 0 : i32
    return %c0_i32, %c0_i32_0 : i32, i32
  }
  func.func @transform_2(%arg0: i32) -> (i32, i32) {
    %c0_i32 = arith.constant 0 : i32
    %c0_i32_0 = arith.constant 0 : i32
    return %arg0, %c0_i32 : i32, i32
  }
  func.func @transform_3(%arg0: i32) -> (i32, i32, i32) {
    %c0_i32 = arith.constant 0 : i32
    %c0_i32_0 = arith.constant 0 : i32
    %c0_i32_1 = arith.constant 0 : i32
    return %arg0, %c0_i32, %c0_i32_0 : i32, i32, i32
  }
}

</mosaic_0001>

<bundles_post_ra>
// kernel: tpu_custom_call.1
= control target key start
LH: loop header
LB: loop body
LE: loop exit
PB: predicated region body
PF: predicated region fallthrough
CT: control target
= control target key end

     0   :  { %9 = vsyncpa [#allocation3], 0  ;;  %s426_s0 = inlined_call_operand.hbm [shape: bf16[8,128], index: 0, kind: input, shape index: {}]   ;;  %s427_s1 = inlined_call_operand.hbm [shape: bf16[128,128], index: 1, kind: input, shape index: {}]   ;;  %s428_s2 = inlined_call_operand.hbm [shape: f32[8,128], index: 2, kind: output, shape index: {0}]   ;;  %s429_s3 = inlined_call_operand.hbm [shape: f32[1,2,128], index: 3, kind: output, shape index: {1}]  }
   0x1   :  { %10 = vsyncpa [#allocation6], 0 }
   0x2   :  { %11 = vsyncpa [#allocation4], 0 }
   0x3   :  { %12 = vsyncpa [#allocation9], 0  ;;  %s343_s12 = smov [#allocation2]   ;;  %s344_s14 = smov [#allocation5]  }
   0x4   :  { %s19_s13 = sshll.u32 %s343_s12, 4  ;;  %s28_s15 = sshll.u32 %s344_s14, 4  ;;  %s20_s13 = int_to_ptr.vmem [resolvable:$true] %s19_s13  ;;  %s371_s15 = int_to_ptr.vmem [resolvable:$true] %s28_s15 }
   0x5   :  { %s247_s18 = scalar_lea.hbm %s426_s0, 64 }
   0x6   :  { %p248_p0 = scmp.ne.s32.totalorder %s426_s0, %s247_s18  ;;  %p251_p1 = scmp.lt.u32.totalorder %s247_s18, %s426_s0 }
   0x8   :  { %p253_p2 = pnand %p251_p1, %p248_p0 }
   0xa   :  { %256 = shalt.err (!%p253_p2)
}
   0xb   :  { %s257_s23 = scalar_lea.vmem %s20_s13, 64  ;;  %p262_p4 = scmp.lt.s32.totalorder %s20_s13, %s20_s13 }
   0xc   :  { %p258_p3 = scmp.ne.s32.totalorder %s20_s13, %s257_s23  ;;  %p263_p5 = scmp.lt.s32.totalorder %s257_s23, %s257_s23 }
   0xe   :  { %p264_p6 = por %p263_p5, %p262_p4 }
  0x10   :  { %p265_p7 = pnand %p264_p6, %p258_p3 }
  0x12   :  { %268 = shalt.err (!%p265_p7)
}
  0x13   :  { %22 = dma.hbm_to_vmem [thread:$0]  %s426_s0, 64, %s20_s13, [#allocation3]  }
  0x14   :  { %s269_s28 = scalar_lea.hbm %s427_s1, 1024 }
  0x15   :  { %p270_p8 = scmp.ne.s32.totalorder %s427_s1, %s269_s28  ;;  %p273_p9 = scmp.lt.u32.totalorder %s269_s28, %s427_s1 }
  0x17   :  { %p275_p10 = pnand %p273_p9, %p270_p8 }
  0x19   :  { %278 = shalt.err (!%p275_p10)
}
  0x1a   :  { %s279_s6 = scalar_lea.vmem %s371_s15, 1024  ;;  %p284_p12 = scmp.lt.s32.totalorder %s371_s15, %s371_s15 }
  0x1b   :  { %p280_p11 = scmp.ne.s32.totalorder %s371_s15, %s279_s6  ;;  %p285_p13 = scmp.lt.s32.totalorder %s279_s6, %s279_s6 }
  0x1d   :  { %p286_p0 = por %p285_p13, %p284_p12 }
  0x1f   :  { %p287_p1 = pnand %p286_p0, %p280_p11 }
  0x21   :  { %290 = shalt.err (!%p287_p1)
}
  0x22   :  { %s345_s0 = smov 64   ;;  %s346_s7 = smov 4  }
  0x23   :  { %34 = dma.hbm_to_vmem [thread:$0]  %s427_s1, 1024, %s371_s15, [#allocation6], %s345_s0, %s345_s0, %s346_s7  }
  0x24   :  { %335 = dma.done.wait [#allocation3], 64  }
  0x25   :  { %336 = vsyncadd [#allocation3], 4294967232 }
  0x26   :  { %337 = dma.done.wait [#allocation6], 1024  }
  0x27   :  { %338 = vsyncadd [#allocation6], 4294966272  ;;  %v347_v0 = vmov 0.0   ;;  %vm348_vm0 = vmmov 0   ;;  %v239_v1 = vld [vmem:[#allocation5] sm:$0xff]   ;;  %v240_v2 = vld [vmem:[#allocation5 + $0x8] sm:$0xff]  }
  0x28   :  { %211 = vmatprep.subr.bf16.mxu0 %v347_v0  ;;  %227 = vmatprep.mubr.msk.bf16.mxu0 %vm348_vm0, %v347_v0  ;;  %v241_v3 = vld [vmem:[#allocation5 + $0x10] sm:$0xff]   ;;  %v242_v4 = vld [vmem:[#allocation5 + $0x18] sm:$0xff]   ;;  %v243_v5 = vld [vmem:[#allocation5 + $0x20] sm:$0xff]   ;;  %s349_s1 = smov [#allocation7]  }
  0x29   :  { %212 = vmatpush3.bf16.msra.mxu0 %v239_v1  ;;  %v244_v6 = vld [vmem:[#allocation5 + $0x28] sm:$0xff]   ;;  %v245_v7 = vld [vmem:[#allocation5 + $0x30] sm:$0xff]   ;;  %v246_v8 = vld [vmem:[#allocation5 + $0x38] sm:$0xff]   ;;  %s170_s10 = sshll.u32 %s349_s1, 4  ;;  %s171_s10 = int_to_ptr.vmem [resolvable:$true] %s170_s10 }
  0x2a   :  { %213 = vmatprep.subr.bf16.mxu0 %v347_v0  ;;  %v42_v9 = vld [vmem:[#allocation2] sm:$0xf]  ;;  %s291_s11 = scalar_lea.vmem %s171_s10, 128  ;;  %p296_p3 = scmp.lt.s32.totalorder %s171_s10, %s171_s10 }
  0x2b   :  { %p292_p2 = scmp.ne.s32.totalorder %s171_s10, %s291_s11  ;;  %p297_p4 = scmp.lt.s32.totalorder %s291_s11, %s291_s11 }
  0x2d   :  { %214 = vmatpush3.bf16.msra.mxu0 %v240_v2  ;;  %p298_p5 = por %p297_p4, %p296_p3 }
  0x2e   :  { %215 = vmatprep.subr.bf16.mxu0 %v347_v0 }
  0x2f   :  { %p299_p6 = pnand %p298_p5, %p292_p2 }
  0x31   :  { %216 = vmatpush3.bf16.msra.mxu0 %v241_v3 }
  0x32   :  { %217 = vmatprep.subr.bf16.mxu0 %v347_v0 }
  0x35   :  { %218 = vmatpush3.bf16.msra.mxu0 %v242_v4 }
  0x36   :  { %219 = vmatprep.subr.bf16.mxu0 %v347_v0 }
  0x39   :  { %220 = vmatpush3.bf16.msra.mxu0 %v243_v5 }
  0x3a   :  { %221 = vmatprep.subr.bf16.mxu0 %v347_v0 }
  0x3d   :  { %222 = vmatpush3.bf16.msra.mxu0 %v244_v6 }
  0x3e   :  { %223 = vmatprep.subr.bf16.mxu0 %v347_v0 }
  0x41   :  { %224 = vmatpush3.bf16.msra.mxu0 %v245_v7 }
  0x42   :  { %225 = vmatprep.subr.bf16.mxu0 %v347_v0 }
  0x45   :  { %226 = vmatpush3.bf16.msra.mxu0 %v246_v8 }
  0x48   :  { %228 = vmatmul.mubr.bf16.vlgmr.msra.gmra.mrb[0].mxu0 %v42_v9 }
 0x11b   :  { %v141_v10 = vpop.f32.mrb[0].mxu0 }
 0x11c   :  { %v148_v11 = vrot.slane %v141_v10, 4  ;;  %v154_v12 = vmul.f32 %v141_v10, %v141_v10  ;;  %147 = vst [vmem:[#allocation7] sm:$0xff] %v141_v10  ;;  %v229_v13 = vpop.f32.mrb[1].mxu0 }
 0x11d   :  { %v144_v14 = vpop.f32.mrb[2].mxu0 }
 0x11e   :  { %302 = shalt.err (!%p299_p6)
}
 0x11f   :  { %s303_s14 = scalar_lea.hbm %s428_s2, 128 }
 0x120   :  { %p304_p7 = scmp.ne.s32.totalorder %s428_s2, %s303_s14  ;;  %p307_p8 = scmp.lt.u32.totalorder %s303_s14, %s428_s2 }
 0x122   :  { %p309_p9 = pnand %p307_p8, %p304_p7 }
 0x124   :  { %312 = shalt.err (!%p309_p9)
}
 0x125   :  { %173 = dma.vmem_to_hbm [thread:$0]  %s171_s10, 128, %s428_s2, [#allocation4]   ;;  %v149_v15 = vadd.f32 %v148_v11, %v141_v10  ;;  %v155_v16 = vrot.slane %v154_v12, 4  ;;  %v230_v17 = vpop.f32.mrb[3].mxu0  ;;  %vm161_vm1 = vcmask 1040384  }
 0x126   :  { %s350_s21 = smov [#allocation8]  }
 0x127   :  { %v150_v18 = vrot.slane %v149_v15, 2  ;;  %v156_v19 = vadd.f32 %v155_v16, %v154_v12  ;;  %s180_s22 = sshll.u32 %s350_s21, 4  ;;  %s181_s22 = int_to_ptr.vmem [resolvable:$true] %s180_s22 }
 0x128   :  { %s313_s23 = scalar_lea.vmem %s181_s22, 32  ;;  %p318_p11 = scmp.lt.s32.totalorder %s181_s22, %s181_s22 }
 0x129   :  { %v151_v20 = vadd.f32 %v150_v18, %v149_v15  ;;  %v157_v21 = vrot.slane %v156_v19, 2  ;;  %p314_p10 = scmp.ne.s32.totalorder %s181_s22, %s313_s23  ;;  %p319_p12 = scmp.lt.s32.totalorder %s313_s23, %s313_s23 }
 0x12b   :  { %v152_v22 = vrot.slane %v151_v20, 1  ;;  %v158_v23 = vadd.f32 %v157_v21, %v156_v19  ;;  %p320_p13 = por %p319_p12, %p318_p11 }
 0x12d   :  { %v159_v24 = vrot.slane %v158_v23, 1  ;;  %v153_v25 = vadd.f32 %v152_v22, %v151_v20  ;;  %p321_p0 = pnand %p320_p13, %p314_p10 }
 0x12f   :  { %v160_v26 = vadd.f32 %v159_v24, %v158_v23 }
 0x131   :  { %v162_v27 = vsel %vm161_vm1, %v153_v25, %v160_v26 }
 0x132   :  { %163 = vst [vmem:[#allocation8] sm:$0x3] %v162_v27 }
 0x133   :  { %324 = shalt.err (!%p321_p0)
}
 0x134   :  { %s325_s25 = scalar_lea.hbm %s429_s3, 32 }
 0x135   :  { %p326_p1 = scmp.ne.s32.totalorder %s429_s3, %s325_s25  ;;  %p329_p2 = scmp.lt.u32.totalorder %s325_s25, %s429_s3 }
 0x137   :  { %p331_p3 = pnand %p329_p2, %p326_p1 }
 0x139   :  { %334 = shalt.err (!%p331_p3)
}
 0x13a   :  { %183 = dma.vmem_to_hbm [thread:$0]  %s181_s22, 32, %s429_s3, [#allocation9]  }
 0x13b   :  { %339 = dma.done.wait [#allocation4], 128  }
 0x13c   :  { %340 = vsyncadd [#allocation4], 4294967168 }
 0x13d   :  { %341 = dma.done.wait [#allocation9], 32  }
 0x13e   :  { %342 = vsyncadd [#allocation9], 4294967264 }
 0x13f   :  { %190 = vsyncpa [#allocation3], 1 }
 0x140   :  { %191 = vsyncpa [#allocation6], 1 }
 0x141   :  { %192 = vsyncpa [#allocation4], 1 }
 0x142   :  { %193 = vsyncpa [#allocation9], 1 }

</bundles_post_ra>
